<compile_context>
chip_gen: v7x
topology: tpu7x:2x2x1
jax: 0.10.0
libtpu: 0.0.40
codegen_flags: <defaults>
</compile_context>

<pallas_src>
import jax
import jax.numpy as jnp
from jax.experimental import pallas as pl
from jax.experimental.pallas import tpu as pltpu


def _luong_kernel(h_ref, q_ref, e_ref, et_ref, out_ref):
    # h_ref:   (BB, T, LD)   history slab, LD = L*D, lane-dense
    # q_ref:   (BB, 1, LD)   pre-projected query q = x @ W, flattened like H
    # e_ref:   (LD, LP)      segment indicator E[k, l] = (k // D == l), LP >= L
    # et_ref:  (LP, LD)      its transpose (rows >= L are all-zero)
    # out_ref: (BB, 1, LD)
    h = h_ref[...].astype(jnp.float32)          # (BB, T, LD)
    q = q_ref[...].astype(jnp.float32)          # (BB, 1, LD)
    e = e_ref[...]                              # (LD, LP)
    et = et_ref[...]                            # (LP, LD)

    BB, T, LD = h.shape
    LP = e.shape[1]

    # per-element product; segmented lane-reduction over each D-chunk is done
    # on the MXU via the indicator matrix:
    #   scores[b, t, l] = sum_d h[b, t, l*D + d] * q[b, l*D + d]
    prod = h * q                                                     # VPU
    scores = jnp.dot(prod.reshape(BB * T, LD), e,
                     preferred_element_type=jnp.float32)             # MXU
    scores = scores.reshape(BB, T, LP)          # padded cols (>= L) are 0

    # numerically stable softmax over the history axis T (sublane reduction).
    # Padded columns hold all-zero scores -> finite weights, zeroed below.
    m = jnp.max(scores, axis=1, keepdims=True)                        # (BB,1,LP)
    ex = jnp.exp(scores - m)                                          # EUP
    w = ex / jnp.sum(ex, axis=1, keepdims=True)                       # (BB,T,LP)

    # broadcast weights back over the D lanes of each location (MXU again);
    # the all-zero rows of et kill the padded columns' contribution.
    wfull = jnp.dot(w.reshape(BB * T, LP), et,
                    preferred_element_type=jnp.float32)               # MXU
    wfull = wfull.reshape(BB, T, LD)

    # weighted sum of the *original* H rows over T (sublane reduction).
    out_ref[...] = jnp.sum(wfull * h, axis=1, keepdims=True).astype(out_ref.dtype)


def _auto_block_b(B, per_b_bytes, target_bytes=2 * 1024 * 1024):
    """Largest divisor of B whose H tile is <= ~2 MiB (sweet spot for amortizing
    per-step overhead while staying well under scoped VMEM with double
    buffering), keeping >= 2 grid steps so the parallel axis can shard across
    v7x's two TensorCores."""
    best = 1
    for bb in range(1, B + 1):
        if B % bb != 0:
            continue
        grid_len = B // bb
        if bb * per_b_bytes <= target_bytes and (grid_len >= 2 or B == 1):
            best = bb
    return best


def luong_attention(H, x, W, b, *, block_b=None):
    """H: [B, T, L, D], x: [B, L, D], W: [D, D] (torch Linear weight), b: [D].

    The Linear bias only adds a per-(b, l) constant (x . b) to the scores,
    which softmax over T is invariant to, so `b` does not affect the result.
    """
    B, T, L, D = H.shape
    LD = L * D
    LP = ((L + 127) // 128) * 128   # pad the location axis of the indicator to
                                    # a full lane width (128) for dense matmuls

    # Fold the Linear into the query: q = x @ W (one MXU matmul done by XLA).
    q = jnp.matmul(x, W).reshape(B, 1, LD)
    del b  # softmax-invariant constant; see docstring.

    # Free layout plumbing: collapse the contiguous trailing (L, D) dims so the
    # kernel sees a lane-dense last dimension.
    Hc = H.reshape(B, T, LD)

    # Constant segment-indicator matrices (location l owns lanes [l*D, (l+1)*D)).
    seg = jnp.arange(LD) // D                                  # (LD,)
    loc = jnp.arange(LP)                                       # (LP,)
    E = (seg[:, None] == loc[None, :]).astype(jnp.float32)     # (LD, LP)
    Et = (loc[:, None] == seg[None, :]).astype(jnp.float32)    # (LP, LD)

    if block_b is None:
        per_b_bytes = T * LD * H.dtype.itemsize
        block_b = _auto_block_b(B, per_b_bytes)
    assert B % block_b == 0, "block_b must divide the batch size"
    grid = (B // block_b,)

    out = pl.pallas_call(
        _luong_kernel,
        out_shape=jax.ShapeDtypeStruct((B, 1, LD), H.dtype),
        grid=grid,
        in_specs=[
            # H in its native HBM layout (trailing dims merely collapsed).
            pl.BlockSpec((block_b, T, LD), lambda i: (i, 0, 0)),
            pl.BlockSpec((block_b, 1, LD), lambda i: (i, 0, 0)),
            pl.BlockSpec((LD, LP), lambda i: (0, 0)),
            pl.BlockSpec((LP, LD), lambda i: (0, 0)),
        ],
        out_specs=pl.BlockSpec((block_b, 1, LD), lambda i: (i, 0, 0)),
        compiler_params=pltpu.CompilerParams(
            dimension_semantics=("parallel",)),
    )(Hc, q, E, Et)

    return out.reshape(B, L, D)


def _reference(H, x, W, b):
    # Mirrors the PyTorch forward exactly (including the bias).
    B, T, L, D = H.shape
    N = B * L
    Hf = jnp.transpose(H, (0, 2, 1, 3)).reshape(N, T, D)
    xf = x.reshape(N, 1, D)
    out = Hf @ W.T + b                                   # (N, T, D)
    scores = jnp.einsum('nqd,ntd->nqt', xf, out)         # (N, 1, T)
    weights = jax.nn.softmax(scores, axis=2).reshape(N, T, 1)
    res = jnp.sum(weights * Hf, axis=1)
    return res.reshape(B, L, D)


if __name__ == "__main__":
    B, T, L, D = 2, 8, 4, 32   # batch, hist_len, num_locs, hid_dim

    key = jax.random.PRNGKey(0)
    kH, kx, kW, kb = jax.random.split(key, 4)
    H = jax.random.normal(kH, (B, T, L, D), dtype=jnp.float32)
    x = jax.random.normal(kx, (B, L, D), dtype=jnp.float32)
    # deterministic "Linear(hid_dim, hid_dim)" params
    W = jax.random.normal(kW, (D, D), dtype=jnp.float32) * (1.0 / jnp.sqrt(D))
    b = jax.random.normal(kb, (D,), dtype=jnp.float32) * 0.01

    out = jax.block_until_ready(luong_attention(H, x, W, b))

    ref = _reference(H, x, W, b)
    assert out.shape == (B, L, D)
    assert jnp.allclose(out, ref, atol=1e-4, rtol=1e-4), "mismatch vs reference"

    print("KERNEL_OK")
</pallas_src>

<mosaic_0001>
module attributes {stable_mosaic.version = 11 : i64} {
  func.func @_luong_kernel(%arg0: i32, %arg1: memref<1x8x128xf32, #tpu.memory_space<vmem>>, %arg2: memref<1x1x128xf32, #tpu.memory_space<vmem>>, %arg3: memref<128x128xf32, #tpu.memory_space<vmem>>, %arg4: memref<128x128xf32, #tpu.memory_space<vmem>>, %arg5: memref<1x1x128xf32, #tpu.memory_space<vmem>>) attributes {dimension_semantics = [#tpu.dimension_semantics<parallel>], iteration_bounds = array<i64: 2>, scalar_prefetch = 0 : i64, scratch_operands = 0 : i64, tpu.core_type = #tpu.core_type<tc>, window_params = [{transform_indices = @transform_0, window_bounds = array<i64: 1, 8, 128>}, {transform_indices = @transform_1, window_bounds = array<i64: 1, 1, 128>}, {pipeline_mode = #tpu.pipeline_mode<synchronous>, transform_indices = @transform_2, window_bounds = array<i64: 128, 128>}, {pipeline_mode = #tpu.pipeline_mode<synchronous>, transform_indices = @transform_3, window_bounds = array<i64: 128, 128>}, {transform_indices = @transform_4, window_bounds = array<i64: 1, 1, 128>}]} {
    %c0 = arith.constant 0 : index
    %c0_0 = arith.constant 0 : index
    %c0_1 = arith.constant 0 : index
    %0 = vector.load %arg1[%c0, %c0_0, %c0_1] : memref<1x8x128xf32, #tpu.memory_space<vmem>>, vector<1x8x128xf32>
    %c0_2 = arith.constant 0 : index
    %c0_3 = arith.constant 0 : index
    %c0_4 = arith.constant 0 : index
    %1 = vector.load %arg2[%c0_2, %c0_3, %c0_4] : memref<1x1x128xf32, #tpu.memory_space<vmem>>, vector<1x1x128xf32>
    %c0_5 = arith.constant 0 : index
    %c0_6 = arith.constant 0 : index
    %2 = vector.load %arg3[%c0_5, %c0_6] : memref<128x128xf32, #tpu.memory_space<vmem>>, vector<128x128xf32>
    %c0_7 = arith.constant 0 : index
    %c0_8 = arith.constant 0 : index
    %3 = vector.load %arg4[%c0_7, %c0_8] : memref<128x128xf32, #tpu.memory_space<vmem>>, vector<128x128xf32>
    %4 = vector.broadcast %1 : vector<1x1x128xf32> to vector<1x8x128xf32>
    %5 = arith.mulf %0, %4 : vector<1x8x128xf32>
    %6 = vector.shape_cast %5 : vector<1x8x128xf32> to vector<8x128xf32>
    %cst = arith.constant dense<0.000000e+00> : vector<8x128xf32>
    %7 = tpu.matmul %6, %2, %cst {dimension_numbers = #tpu.dot_dimension_numbers<[1], [0], [0], [1], [0, 0, 1, 1], [], []>} : vector<8x128xf32>, vector<128x128xf32>, vector<8x128xf32> -> vector<8x128xf32>
    %8 = vector.shape_cast %7 : vector<8x128xf32> to vector<1x8x128xf32>
    %cst_9 = arith.constant dense<0xFF800000> : vector<1x128xf32>
    %9 = vector.multi_reduction <maximumf>, %8, %cst_9 [1] : vector<1x8x128xf32> to vector<1x128xf32>
    %10 = vector.shape_cast %9 : vector<1x128xf32> to vector<1x1x128xf32>
    %11 = vector.broadcast %10 : vector<1x1x128xf32> to vector<1x8x128xf32>
    %12 = arith.subf %8, %11 : vector<1x8x128xf32>
    %13 = math.exp %12 : vector<1x8x128xf32>
    %cst_10 = arith.constant dense<0.000000e+00> : vector<1x128xf32>
    %14 = vector.multi_reduction <add>, %13, %cst_10 [1] : vector<1x8x128xf32> to vector<1x128xf32>
    %15 = vector.shape_cast %14 : vector<1x128xf32> to vector<1x1x128xf32>
    %16 = vector.broadcast %15 : vector<1x1x128xf32> to vector<1x8x128xf32>
    %17 = arith.divf %13, %16 : vector<1x8x128xf32>
    %18 = vector.shape_cast %17 : vector<1x8x128xf32> to vector<8x128xf32>
    %cst_11 = arith.constant dense<0.000000e+00> : vector<8x128xf32>
    %19 = tpu.matmul %18, %3, %cst_11 {dimension_numbers = #tpu.dot_dimension_numbers<[1], [0], [0], [1], [0, 0, 1, 1], [], []>} : vector<8x128xf32>, vector<128x128xf32>, vector<8x128xf32> -> vector<8x128xf32>
    %20 = vector.shape_cast %19 : vector<8x128xf32> to vector<1x8x128xf32>
    %21 = arith.mulf %20, %0 : vector<1x8x128xf32>
    %cst_12 = arith.constant dense<0.000000e+00> : vector<1x128xf32>
    %22 = vector.multi_reduction <add>, %21, %cst_12 [1] : vector<1x8x128xf32> to vector<1x128xf32>
    %23 = vector.shape_cast %22 : vector<1x128xf32> to vector<1x1x128xf32>
    %c0_13 = arith.constant 0 : index
    %c0_14 = arith.constant 0 : index
    %c0_15 = arith.constant 0 : index
    %24 = vector.load %arg5[%c0_13, %c0_14, %c0_15] : memref<1x1x128xf32, #tpu.memory_space<vmem>>, vector<1x1x128xf32>
    tpu.vector_store %arg5[%c0_13, %c0_14, %c0_15], %23 {strides = array<i32>} : memref<1x1x128xf32, #tpu.memory_space<vmem>>, vector<1x1x128xf32>,
    return
  }
  func.func @transform_0(%arg0: i32) -> (i32, i32, i32) {
    %c0_i32 = arith.constant 0 : i32
    %c0_i32_0 = arith.constant 0 : i32
    %c0_i32_1 = arith.constant 0 : i32
    return %arg0, %c0_i32, %c0_i32_0 : i32, i32, i32
  }
  func.func @transform_1(%arg0: i32) -> (i32, i32, i32) {
    %c0_i32 = arith.constant 0 : i32
    %c0_i32_0 = arith.constant 0 : i32
    %c0_i32_1 = arith.constant 0 : i32
    return %arg0, %c0_i32, %c0_i32_0 : i32, i32, i32
  }
  func.func @transform_2(%arg0: i32) -> (i32, i32) {
    %c0_i32 = arith.constant 0 : i32
    %c0_i32_0 = arith.constant 0 : i32
    %c0_i32_1 = arith.constant 0 : i32
    return %c0_i32, %c0_i32_0 : i32, i32
  }
  func.func @transform_3(%arg0: i32) -> (i32, i32) {
    %c0_i32 = arith.constant 0 : i32
    %c0_i32_0 = arith.constant 0 : i32
    %c0_i32_1 = arith.constant 0 : i32
    return %c0_i32, %c0_i32_0 : i32, i32
  }
  func.func @transform_4(%arg0: i32) -> (i32, i32, i32) {
    %c0_i32 = arith.constant 0 : i32
    %c0_i32_0 = arith.constant 0 : i32
    %c0_i32_1 = arith.constant 0 : i32
    return %arg0, %c0_i32, %c0_i32_0 : i32, i32, i32
  }
}

</mosaic_0001>

<bundles_post_ra>
// kernel: tpu_custom_call.1
= control target key start
LH: loop header
LB: loop body
LE: loop exit
PB: predicated region body
PF: predicated region fallthrough
CT: control target
= control target key end

     0   :  { %9 = vsyncpa [#allocation3], 0  ;;  %s1261_s0 = inlined_call_operand.hbm [shape: f32[2,8,128], index: 0, kind: input, shape index: {}]   ;;  %s1262_s1 = inlined_call_operand.vmem [shape: f32[2,1,128], index: 1, kind: input, shape index: {}]   ;;  %s1263_s2 = inlined_call_operand.hbm [shape: f32[128,128], index: 2, kind: input, shape index: {}]   ;;  %s1264_s3 = inlined_call_operand.hbm [shape: f32[128,128], index: 3, kind: input, shape index: {}]   ;;  %s1265_s4 = inlined_call_operand.hbm [shape: f32[2,1,128], index: 4, kind: output, shape index: {}]  }
   0x1   :  { %11 = vsyncpa [#allocation3 + $0x1], 0 }
   0x2   :  { %12 = vsyncpa [#allocation6], 0 }
   0x3   :  { %13 = vsyncpa [#allocation4], 0 }
   0x4   :  { %15 = vsyncpa [#allocation4 + $0x1], 0  ;;  %s1003_s15 = smov 0   ;;  %s1005_s16 = smov 0  }
   0x5   :  { %s1007_s17 = smov 0   ;;  %s1009_s18 = smov 0  }
   0x6 LB: > { %s1024_s19 = sadd.s32 4294967295, %s967_s18   ;;  %s568_s20 = sadd.s32 4294967294, %s967_s18   ;;  %s967_s18 = sphi %s1009_s18, %s1285_s18   ;;  %s963_s17 = sphi %s1007_s17, %s1284_s17   ;;  %s959_s16 = sphi %s1005_s16, %s1283_s16   ;;  %s955_s15 = sphi %s1003_s15, %s1282_s15  }
   0x7   : > { %p41_p0 = scmp.ne.s32.totalorder %s959_s16, %s955_s15  ;;  %p1266_p1 = scmp.eq.s32.totalorder %s1024_s19, 0 }
   0x8   : > { %p139_p3 = scmp.eq.s32.totalorder %s568_s20, 1  ;;  %p569_p5 = scmp.ge.s32.totalorder %s967_s18, 1 }
   0x9   : > { %p1033_p4 = por %p1266_p1, %p41_p0  ;;  %p146_p7 = scmp.lt.s32.totalorder %s967_s18, 3 }
   0xa   : > { %p1038_p6 = por %p139_p3, %p41_p0  ;;  %s969_s24 = smov [#allocation5]  }
   0xb   : > { %s1269_s21 = scalar_select %p1033_p4, 1, 0 }
   0xc   : > { %s1270_s22 = scalar_select %p1038_p6, 1, 0 }
   0xd   : > { %p1043_p8 = pnand %p569_p5, %p146_p7  ;;  %s158_s25 = sshll.u32 %s969_s24, 4  ;;  %s1047_s25 = int_to_ptr.vmem [resolvable:$true] %s158_s25 }
   0xe   : > { %s970_s27 = smov [#allocation7]   ;;  %s811_s5 = scalar_lea.hbm %s1263_s2, 2048 }
   0xf   : > { %p747_p9 = pneg %p1043_p8  ;;  %s171_s28 = sshll.u32 %s970_s27, 4  ;;  %s1058_s28 = int_to_ptr.vmem [resolvable:$true] %s171_s28 }
  0x10   : > { %p812_p12 = scmp.ne.s32.totalorder %s1263_s2, %s811_s5  ;;  %p818_p5 = scmp.lt.u32.totalorder %s811_s5, %s1263_s2 }
  0x11   : > { %p1054_p11 = pnand %p747_p9, %p1266_p1 }
  0x13   : > { %p813_p13 = pneg %p1054_p11 }
  0x15   : > { %p814_p0 = pnand %p813_p13, %p812_p12 }
  0x17   : > { %p815_p3 = pneg %p814_p0 }
  0x19   : > { %p820_p7 = pnand %p818_p5, %p815_p3 }
  0x1b   : > { %823 = shalt.err (!%p820_p7)
}
  0x1c   : > { %s824_s10 = scalar_lea.vmem %s1047_s25, 2048  ;;  %p832_p2 = scmp.lt.s32.totalorder %s1047_s25, %s1047_s25 }
  0x1d   : > { %p825_p9 = scmp.ne.s32.totalorder %s1047_s25, %s824_s10  ;;  %p833_p12 = scmp.lt.s32.totalorder %s824_s10, %s824_s10 }
  0x1f   : > { %p827_p10 = pnand %p825_p9, %p813_p13  ;;  %p834_p0 = por %p833_p12, %p832_p2 }
  0x21   : > { %p828_p1 = pneg %p827_p10 }
  0x23   : > { %p835_p6 = pnand %p834_p0, %p828_p1 }
  0x25   : > { %838 = shalt.err (!%p835_p6)
}
  0x26   : > { %s971_s11 = smov 128   ;;  %s972_s12 = smov 8  }
  0x27   : > { %750 = dma.hbm_to_vmem [thread:$0]  (!%p1054_p11), %s1263_s2, 2048, %s1047_s25, [#allocation6], %s971_s11, %s971_s11, %s972_s12  }
  0x28   : > { %s839_s27 = scalar_lea.hbm %s1264_s3, 2048 }
  0x29   : > { %p840_p2 = scmp.ne.s32.totalorder %s1264_s3, %s839_s27  ;;  %p846_p10 = scmp.lt.u32.totalorder %s839_s27, %s1264_s3 }
  0x2b   : > { %p842_p1 = pnand %p840_p2, %p813_p13 }
  0x2d   : > { %p843_p6 = pneg %p842_p1 }
  0x2f   : > { %p848_p3 = pnand %p846_p10, %p843_p6 }
  0x31   : > { %851 = shalt.err (!%p848_p3)
}
  0x32   : > { %s852_s25 = scalar_lea.vmem %s1058_s28, 2048  ;;  %p860_p12 = scmp.lt.s32.totalorder %s1058_s28, %s1058_s28 }
  0x33   : > { %p853_p5 = scmp.ne.s32.totalorder %s1058_s28, %s852_s25  ;;  %p861_p0 = scmp.lt.s32.totalorder %s852_s25, %s852_s25 }
  0x35   : > { %p855_p7 = pnand %p853_p5, %p813_p13  ;;  %p862_p2 = por %p861_p0, %p860_p12 }
  0x37   : > { %p856_p9 = pneg %p855_p7 }
  0x39   : > { %p863_p1 = pnand %p862_p2, %p856_p9 }
  0x3b   : > { %866 = shalt.err (!%p863_p1)
}
  0x3c   : > { %753 = dma.hbm_to_vmem [thread:$0]  (!%p1054_p11), %s1264_s3, 2048, %s1058_s28, [#allocation6], %s971_s11, %s971_s11, %s972_s12  }
  0x3d   : > { %s1113_s9 = sadd.s32 1, %s967_s18   ;;  %s28_s26 = sadd.s32 1, %s963_s17 }
  0x3e   : > { %s25_s10 = ssub.s32 %s967_s18, %s1113_s9  ;;  %p35_p13 = scmp.ne.s32.totalorder %s963_s17, %s959_s16 }
  0x3f   : > { %p26_p6 = scmp.eq.s32.totalorder %s25_s10, 0  ;;  %p36_p10 = scmp.eq.s32.totalorder %s967_s18, 0 }
  0x40   : > { %p1273_p3 = scmp.eq.s32.totalorder %s1024_s19, 1  ;;  %p764_p7 = scmp.lt.s32.totalorder %s967_s18, 2 }
  0x41   : > { %s1129_s14 = scalar_select %p26_p6, %s963_s17, %s28_s26  }
  0x42   : > { %p1123_p5 = por %p1273_p3, %p35_p13  ;;  %p37_p9 = por %p36_p10, %p35_p13 }
  0x43   : > { %s185_s20 = sand.u32 1, %s963_s17   ;;  %s574_s28 = sshll.u32 %s967_s18, 7 }
  0x44   : > { %s1274_s13 = scalar_select %p1123_p5, 1, 0 }
  0x45   : > { %s573_s24 = sshll.u32 %s185_s20, 3  ;;  %s1136_s27 = scalar_lea.hbm %s1261_s0, %s574_s28 }
  0x46   : > { %s189_s29 = scalar_lea.vmem [#allocation2], %s573_s24  ;;  %p1140_p11 = pnand %p764_p7, %p37_p9 }
  0x47   : > { %s196_s30 = sshll.u32 %s189_s29, 4  ;;  %s186_s6 = scalar_lea.sflag [#allocation3], %s185_s20  ;;  %s1138_s30 = int_to_ptr.vmem [resolvable:$true] %s196_s30 }
  0x48   : > { %s867_s25 = scalar_lea.hbm %s1136_s27, 128  ;;  %p869_p0 = pneg %p1140_p11 }
  0x49   : > { %p868_p12 = scmp.ne.s32.totalorder %s1136_s27, %s867_s25  ;;  %s872_s26 = scalar_lea.hbm %s1261_s0, 256 }
  0x4a   : > { %p873_p13 = scmp.lt.u32.totalorder %s1136_s27, %s1261_s0  ;;  %p874_p6 = scmp.lt.u32.totalorder %s872_s26, %s867_s25 }
  0x4b   : > { %p870_p2 = pnand %p869_p0, %p868_p12  ;;  %p876_p3 = scmp.lt.u32.totalorder %s867_s25, %s1136_s27 }
  0x4c   : > { %p875_p10 = por %p874_p6, %p873_p13 }
  0x4d   : > { %p871_p1 = pneg %p870_p2 }
  0x4e   : > { %p877_p7 = por %p876_p3, %p875_p10 }
  0x50   : > { %p878_p9 = pnand %p877_p7, %p871_p1 }
  0x52   : > { %881 = shalt.err (!%p878_p9)
}
  0x53   : > { %s882_s20 = scalar_lea.vmem %s1138_s30, 128  ;;  %s973_s28 = smov [#allocation2]  }
  0x54   : > { %p883_p12 = scmp.ne.s32.totalorder %s1138_s30, %s882_s20  ;;  %s887_s11 = sshll.u32 %s973_s28, 4  ;;  %s888_s11 = int_to_ptr.vmem [resolvable:$false] %s887_s11 }
  0x55   : > { %s889_s12 = scalar_lea.vmem %s888_s11, 256  ;;  %p890_p4 = scmp.lt.s32.totalorder %s1138_s30, %s888_s11 }
  0x56   : > { %p885_p2 = pnand %p883_p12, %p869_p0  ;;  %p891_p13 = scmp.lt.s32.totalorder %s889_s12, %s882_s20 }
  0x58   : > { %p886_p5 = pneg %p885_p2  ;;  %p892_p6 = por %p891_p13, %p890_p4 }
  0x5a   : > { %p893_p10 = pnand %p892_p6, %p886_p5 }
  0x5c   : > { %896 = shalt.err (!%p893_p10)
}
  0x5d   : > { %757 = dma.hbm_to_vmem [thread:$0]  (!%p1140_p11), %s1136_s27, 128, %s1138_s30, %s186_s6  }
  0x5e   : > { %211 = sbr.rel (%p1043_p8) target bundleno = 643 (0x283), region = 36  ;;  %s1172_s29 = sand.u32 (!%p1043_p8), 1, %s959_s16  }
  0x5f   : > { %s576_s25 = sshll.u32 (!%p1043_p8), %s1172_s29, 3  ;;  %s214_s7 = scalar_lea.sflag (!%p1043_p8), [#allocation3], %s1172_s29 }
  0x60   : > { %s1176_s8 = scalar_lea.vmem (!%p1043_p8), [#allocation2], %s576_s25  ;;  %p1276_p4 = scmp.ne.s32.totalorder (!%p1043_p8), %s1269_s21, 0 }
  0x65   : > { %942 = dma.done.wait (%p1276_p4), %s214_s7, 128  }
  0x66   : > { %944 = vsyncadd (%p1276_p4), %s214_s7, 4294967168  ;;  %p1277_p5 = scmp.eq.s32.totalorder %s1024_s19, 0 }
  0x68   : > { %946 = dma.done.wait (%p1277_p5), [#allocation6], 4096   ;;  %p1278_p8 = pmov %p1277_p5 }
  0x69   : > { %v974_v0 = vmov 0.0|0.0   ;;  %vm975_vm0 = vmmov 0   ;;  %v976_v1 = vmov 0.0   ;;  %v257_v2 = vld [vmem:[#allocation5] sm:$0xff]  ;;  %v258_v3 = vld [vmem:[#allocation5 + $0x8] sm:$0xff]  ;;  %v259_v4 = vld [vmem:[#allocation5 + $0x10] sm:$0xff] }
  0x6a   : > { %948 = vsyncadd (%p1278_p8), [#allocation6], 4294963200  ;;  %687 = vmatprep.subr.bf16.mxu0 %v974_v0  ;;  %649 = vmatprep.mubr.msk.f32.mxu0 %vm975_vm0, %v976_v1  ;;  %v688_v5 = vpack.c.bf16 %v258_v3, %v257_v2  ;;  %v260_v6 = vld [vmem:[#allocation5 + $0x18] sm:$0xff]  ;;  %v261_v8 = vld [vmem:[#allocation5 + $0x20] sm:$0xff]  ;;  %p252_p11 = scmp.lt.s32.totalorder %s1024_s19, 1  ;;  %s580_s5 = sshll.u32 %s1024_s19, 4 }
  0x6b   : > { %711 = vmatprep.subr.bf16.mxu1 %v974_v0  ;;  %684 = vmatprep.mubr.msk.f32.mxu1 %vm975_vm0, %v976_v1  ;;  %v691_v7 = vpack.c.bf16 %v260_v6, %v259_v4  ;;  %v262_v9 = vld [vmem:[#allocation5 + $0x28] sm:$0xff]  ;;  %v263_v11 = vld [vmem:[#allocation5 + $0x30] sm:$0xff]  ;;  %v264_v12 = vld [vmem:[#allocation5 + $0x38] sm:$0xff]  ;;  %s251_s6 = scalar_lea.vmem [#allocation8], %s1172_s29  ;;  %s1217_s20 = scalar_lea.hbm %s1265_s4, %s580_s5 }
  0x6c   : > { %689 = vmatpush3.bf16.msra.mxu0 %v688_v5  ;;  %v694_v10 = vpack.c.bf16 %v262_v9, %v261_v8  ;;  %v697_v13 = vpack.c.bf16 %v264_v12, %v263_v11  ;;  %v265_v14 = vld [vmem:[#allocation5 + $0x40] sm:$0xff]  ;;  %v266_v15 = vld [vmem:[#allocation5 + $0x48] sm:$0xff]  ;;  %v267_v17 = vld [vmem:[#allocation5 + $0x50] sm:$0xff]  ;;  %s253_s21 = scalar_select %p252_p11, %s1024_s19, 1 }
  0x6d   : > { %690 = vmatprep.subr.bf16.mxu0 %v974_v0  ;;  %v700_v16 = vpack.c.bf16 %v266_v15, %v265_v14  ;;  %v268_v18 = vld [vmem:[#allocation5 + $0x58] sm:$0xff]  ;;  %v269_v20 = vld [vmem:[#allocation5 + $0x60] sm:$0xff]  ;;  %v270_v21 = vld [vmem:[#allocation5 + $0x68] sm:$0xff]  ;;  %s474_s26 = sshll.u32 %s251_s6, 4  ;;  %s462_s28 = scalar_lea.sflag [#allocation4], %s1172_s29  ;;  %s1219_s26 = int_to_ptr.vmem [resolvable:$true] %s474_s26 }
  0x6e   : > { %v703_v19 = vpack.c.bf16 %v268_v18, %v267_v17  ;;  %v706_v22 = vpack.c.bf16 %v270_v21, %v269_v20  ;;  %v271_v23 = vld [vmem:[#allocation5 + $0x70] sm:$0xff]  ;;  %v272_v24 = vld [vmem:[#allocation5 + $0x78] sm:$0xff]  ;;  %s254_s30 = scalar_lea.vmem %s1262_s1, %s253_s21  ;;  %v273_v29 = vld [vmem:[#allocation7] sm:$0xff]  ;;  %s897_s11 = scalar_lea.vmem %s1219_s26, 16 }
  0x6f   : > { %v709_v25 = vpack.c.bf16 %v272_v24, %v271_v23  ;;  %v1200_v26 = vld [vmem:[%s1176_s8] sm:$0xff]  ;;  %v274_v30 = vld [vmem:[#allocation7 + $0x8] sm:$0xff]  ;;  %v277_v35 = vld [vmem:[#allocation7 + $0x20] sm:$0xff]  ;;  %p898_p0 = scmp.ne.s32.totalorder %s1219_s26, %s897_s11  ;;  %p1279_p1 = scmp.ne.s32.totalorder %s1274_s13, 0 }
  0x70   : > { %692 = vmatpush3.bf16.msra.mxu0 %v691_v7  ;;  %v579_v27 = vld [vmem:[%s254_s30] ss:$0 sm:$0xff]  ;;  %v712_v32 = vpack.c.bf16 %v274_v30, %v273_v29  ;;  %v276_v33 = vld [vmem:[#allocation7 + $0x18] sm:$0xff]  ;;  %v278_v36 = vld [vmem:[#allocation7 + $0x28] sm:$0xff]  ;;  %s977_s19 = smov [#allocation8]  }
  0x71   : > { %693 = vmatprep.subr.bf16.mxu0 %v974_v0  ;;  %v295_v28 = vmul.f32 %v579_v27, %v1200_v26  ;;  %v275_v31 = vld [vmem:[#allocation7 + $0x10] sm:$0xff]  ;;  %v718_v37 = vpack.c.bf16 %v278_v36, %v277_v35  ;;  %v280_v39 = vld [vmem:[#allocation7 + $0x38] sm:$0xff]  ;;  %v281_v41 = vld [vmem:[#allocation7 + $0x40] sm:$0xff]  ;;  %p899_p3 = pnand %p898_p0, %p1279_p1  ;;  %s901_s12 = sshll.u32 %s977_s19, 4  ;;  %s902_s12 = int_to_ptr.vmem [resolvable:$false] %s901_s12 }
  0x72   : > { %713 = vmatpush3.bf16.msra.mxu1 %v712_v32  ;;  %v715_v34 = vpack.c.bf16 %v276_v33, %v275_v31  ;;  %v279_v38 = vld [vmem:[#allocation7 + $0x30] sm:$0xff]  ;;  %v282_v42 = vld [vmem:[#allocation7 + $0x48] sm:$0xff]  ;;  %v284_v45 = vld [vmem:[#allocation7 + $0x58] sm:$0xff]  ;;  %s903_s25 = scalar_lea.vmem %s902_s12, 32  ;;  %p904_p9 = scmp.lt.s32.totalorder %s1219_s26, %s902_s12 }
  0x73   : > { %714 = vmatprep.subr.bf16.mxu1 %v974_v0  ;;  %v721_v40 = vpack.c.bf16 %v280_v39, %v279_v38  ;;  %v724_v43 = vpack.c.bf16 %v282_v42, %v281_v41  ;;  %v283_v44 = vld [vmem:[#allocation7 + $0x50] sm:$0xff]  ;;  %v285_v47 = vld [vmem:[#allocation7 + $0x60] sm:$0xff]  ;;  %v286_v48 = vld [vmem:[#allocation7 + $0x68] sm:$0xff]  ;;  %p900_p7 = pneg %p899_p3  ;;  %p905_p12 = scmp.lt.s32.totalorder %s903_s25, %s897_s11 }
  0x74   : > { %695 = vmatpush3.bf16.msra.mxu0 %v694_v10  ;;  %v727_v46 = vpack.c.bf16 %v284_v45, %v283_v44  ;;  %v730_v49 = vpack.c.bf16 %v286_v48, %v285_v47  ;;  %v287_v50 = vld [vmem:[#allocation7 + $0x70] sm:$0xff]  ;;  %v288_v51 = vld [vmem:[#allocation7 + $0x78] sm:$0xff] }
  0x75   : > { %696 = vmatprep.subr.bf16.mxu0 %v974_v0  ;;  %v733_v52 = vpack.c.bf16 %v288_v51, %v287_v50  ;;  %p906_p2 = por %p905_p12, %p904_p9 }
  0x76   : > { %716 = vmatpush3.bf16.msra.mxu1 %v715_v34 }
  0x77   : > { %717 = vmatprep.subr.bf16.mxu1 %v974_v0  ;;  %p907_p13 = pnand %p906_p2, %p900_p7 }
  0x78   : > { %698 = vmatpush3.bf16.msra.mxu0 %v697_v13 }
  0x79   : > { %699 = vmatprep.subr.bf16.mxu0 %v974_v0 }
  0x7a   : > { %719 = vmatpush3.bf16.msra.mxu1 %v718_v37 }
  0x7b   : > { %720 = vmatprep.subr.bf16.mxu1 %v974_v0 }
  0x7c   : > { %701 = vmatpush3.bf16.msra.mxu0 %v700_v16 }
  0x7d   : > { %702 = vmatprep.subr.bf16.mxu0 %v974_v0 }
  0x7e   : > { %722 = vmatpush3.bf16.msra.mxu1 %v721_v40 }
  0x7f   : > { %723 = vmatprep.subr.bf16.mxu1 %v974_v0 }
  0x80   : > { %704 = vmatpush3.bf16.msra.mxu0 %v703_v19 }
  0x81   : > { %705 = vmatprep.subr.bf16.mxu0 %v974_v0 }
  0x82   : > { %725 = vmatpush3.bf16.msra.mxu1 %v724_v43 }
  0x83   : > { %726 = vmatprep.subr.bf16.mxu1 %v974_v0 }
  0x84   : > { %707 = vmatpush3.bf16.msra.mxu0 %v706_v22 }
  0x85   : > { %708 = vmatprep.subr.bf16.mxu0 %v974_v0 }
  0x86   : > { %728 = vmatpush3.bf16.msra.mxu1 %v727_v46 }
  0x87   : > { %729 = vmatprep.subr.bf16.mxu1 %v974_v0 }
  0x88   : > { %710 = vmatpush3.bf16.msra.mxu0 %v709_v25 }
  0x8a   : > { %731 = vmatpush3.bf16.msra.mxu1 %v730_v49 }
  0x8b   : > { %650 = vmatmul.mubr.f32.vlgmr.msra.gmra.mrb[0].mxu0 %v295_v28  ;;  %732 = vmatprep.subr.bf16.mxu1 %v974_v0 }
  0x8e   : > { %734 = vmatpush3.bf16.msra.mxu1 %v733_v52 }
 0x15e   : > { %v362_v53 = vpop.f32.mrb[0].mxu0 }
 0x15f   : > { %v366_v54 = vrot.slane %v362_v53, 4  ;;  %v651_v55 = vpop.f32.mrb[1].mxu0 }
 0x161   : > { %v367_v56 = vmax.f32 %v362_v53, %v366_v54 }
 0x163   : > { %v368_v57 = vrot.slane %v367_v56, 2 }
 0x165   : > { %v369_v58 = vmax.f32 %v367_v56, %v368_v57 }
 0x167   : > { %v370_v59 = vrot.slane %v369_v58, 1 }
 0x169   : > { %v371_v60 = vmax.f32 %v369_v58, %v370_v59 }
 0x16b   : > { %v372_v61 = vsub.f32 %v362_v53, %v371_v60 }
 0x16d   : > { %v373_v62 = vmul.f32 1.442695, %v372_v61 }
 0x16f   : > { %807 = vpow2.f32 %v373_v62 }
 0x179   : > { %v808_v63 = vpop.eup %807 }
 0x17a   : > { %v375_v1 = vrot.slane %v808_v63, 4 }
 0x17c   : > { %v376_v2 = vadd.f32 %v808_v63, %v375_v1 }
 0x17e   : > { %v377_v3 = vrot.slane %v376_v2, 2 }
 0x180   : > { %v378_v4 = vadd.f32 %v377_v3, %v376_v2 }
 0x182   : > { %v379_v0 = vrot.slane %v378_v4, 1 }
 0x184   : > { %v380_v5 = vadd.f32 %v379_v0, %v378_v4 }
 0x186   : > { %809 = vrcp.f32 %v380_v5 }
 0x190   : > { %v810_v6 = vpop.eup %809 }
 0x191   : > { %v382_v7 = vmul.f32 %v810_v6, %v808_v63 }
 0x193   : > { %685 = vmatmul.mubr.f32.vlgmr.msra.gmra.mrb[0].mxu1 %v382_v7 }
 0x266   : > { %v449_v8 = vpop.f32.mrb[0].mxu1 }
 0x267   : > { %v453_v9 = vmul.f32 %v449_v8, %v1200_v26  ;;  %v686_v10 = vpop.f32.mrb[1].mxu1 }
 0x269   : > { %v454_v11 = vrot.slane %v453_v9, 4 }
 0x26b   : > { %v455_v12 = vadd.f32 %v454_v11, %v453_v9 }
 0x26d   : > { %v456_v13 = vrot.slane %v455_v12, 2 }
 0x26f   : > { %v457_v14 = vadd.f32 %v456_v13, %v455_v12 }
 0x271   : > { %v458_v15 = vrot.slane %v457_v14, 1 }
 0x273   : > { %v459_v16 = vadd.f32 %v458_v15, %v457_v14 }
 0x275   : > { %460 = vst [vmem:[%s251_s6] sm:$0x1] %v459_v16 }
 0x276   : > { %910 = shalt.err (!%p907_p13)
}
 0x277   : > { %s911_s29 = scalar_lea.hbm %s1217_s20, 16  ;;  %s915_s21 = scalar_lea.hbm %s1265_s4, 32 }
 0x278   : > { %p912_p6 = scmp.ne.s32.totalorder %s1217_s20, %s911_s29  ;;  %p916_p5 = scmp.lt.u32.totalorder %s1217_s20, %s1265_s4 }
 0x279   : > { %p917_p8 = scmp.lt.u32.totalorder %s915_s21, %s911_s29  ;;  %p919_p0 = scmp.lt.u32.totalorder %s911_s29, %s1217_s20 }
 0x27a   : > { %p913_p10 = pnand %p912_p6, %p1279_p1 }
 0x27b   : > { %p918_p11 = por %p917_p8, %p916_p5 }
 0x27c   : > { %p914_p4 = pneg %p913_p10 }
 0x27d   : > { %p920_p3 = por %p919_p0, %p918_p11 }
 0x27f   : > { %p921_p7 = pnand %p920_p3, %p914_p4 }
 0x281   : > { %924 = shalt.err (!%p921_p7)
}
 0x282   : > { %745 = dma.vmem_to_hbm [thread:$0]  (%p1279_p1), %s1219_s26, 16, %s1217_s20, %s462_s28  }
 0x283 PF: > { %s486_s30 = sand.u32 1, %s955_s15   ;;  %p1280_p9 = scmp.ne.s32.totalorder %s1270_s22, 0 }
 0x284   : > { %p1281_p12 = scmp.ge.s32.totalorder %s967_s18, 2  ;;  %s487_s5 = scalar_lea.sflag [#allocation4], %s486_s30 }
 0x286   : > { %p759_p2 = pnand %p1281_p12, %p1280_p9 }
 0x288   : > { %950 = dma.done.wait (!%p759_p2), %s487_s5, 16  }
 0x289   : > { %952 = vsyncadd (!%p759_p2), %s487_s5, 4294967280  ;;  %p18_p13 = scmp.ge.s32.totalorder %s1113_s9, 4   ;;  %s1282_s15 = smov %s959_s16 }
 0x28a   : > { %s1283_s16 = smov %s963_s17  ;;  %s1284_s17 = smov %s1129_s14 }
 0x28b   : > { %s1285_s18 = smov %s1113_s9  ;;  %20 = sbr.rel (!%p18_p13) target bundleno = 6 (0x6), region = 92 }
 0x292   :  { %491 = vsyncpa [#allocation3], 1 }
 0x293   :  { %493 = vsyncpa [#allocation3 + $0x1], 1 }
 0x294   :  { %494 = vsyncpa [#allocation6], 1 }
 0x295   :  { %495 = vsyncpa [#allocation4], 1 }
 0x296   :  { %497 = vsyncpa [#allocation4 + $0x1], 1 }

</bundles_post_ra>
